<compile_context>
chip_gen: v7x
topology: tpu7x:2x2x1
jax: 0.10.0
libtpu: 0.0.40
codegen_flags: <defaults>
</compile_context>

<pallas_src>
import functools

import jax
import jax.numpy as jnp
import numpy as np
from jax.experimental import pallas as pl
from jax.experimental.pallas import tpu as pltpu

SMOOTH = 1e-5

# Tile-size policy:
#   * target ~2 MiB per (sublane-padded) logits block so the DMA dwarfs the
#     ~0.35 us per-grid-step overhead,
#   * cap lanes at 16K because every elementwise op is unrolled per vreg,
#   * remainder / split padding handled by an in-kernel mask.
BLOCK_BYTE_BUDGET = 2 * 1024 * 1024
MAX_BLOCK_LANES = 16 * 1024
# 32 MiB scoped VMEM: above the v5e default (16), equal to v6e/v7x defaults,
# well under every chip's physical capacity (128/128/64 MiB).
VMEM_LIMIT_BYTES = 32 * 1024 * 1024


def _gdice_partial_kernel(hw, tm, tiles_per_seg, needs_mask,
                          logits_ref, gt_ref, tsum_ref, inter_ref, psum_ref):
    """Grid point (n, s, j): one (C, TM) logits tile of batch n, segment s, tile j.

    Accumulates lane-dense (C, 128) partials for this (n, s):
      tsum[c, l]  += sum_{chunks k} target[c, k*128 + l]
      inter[c, l] += sum_{chunks k} (p * target)[c, k*128 + l]
      psum[c, l]  += sum_{chunks k} p[c, k*128 + l]
    Output blocks are resident across the j (reduction) axis; zeroed at j == 0.
    The final 128-lane reduction is done in the JAX epilogue.
    """
    j = pl.program_id(2)

    @pl.when(j == 0)
    def _():
        tsum_ref[...] = jnp.zeros_like(tsum_ref)
        inter_ref[...] = jnp.zeros_like(inter_ref)
        psum_ref[...] = jnp.zeros_like(psum_ref)

    logits = logits_ref[...].astype(jnp.float32)   # (C, TM)
    gt = gt_ref[...].astype(jnp.int32)             # (1, TM), native dtype DMA'd

    # Mask padded / out-of-range columns (only emitted when the covered pixel
    # range exceeds HW: ragged last tile and/or the megacore split padding).
    # Padded logits are forced finite before exp; padded columns are zeroed out
    # of every reduction (otherwise each padded pixel adds sum_c p_c = 1 to the
    # denominator and garbage labels pollute the target sums).
    maskf = None
    if needs_mask:
        tile_idx = pl.program_id(1) * tiles_per_seg + j      # UNclamped index
        col = jax.lax.broadcasted_iota(jnp.int32, (1, tm), 1) + tile_idx * tm
        valid = col < hw                                      # (1, TM) bool
        logits = jnp.where(valid, logits, 0.0)
        maskf = valid.astype(jnp.float32)

    # Softmax over the class (sublane) axis, per pixel column.  The cross-sublane
    # max/sum are only C-deep (cheap); the reciprocal goes to the EUP.
    m = jnp.max(logits, axis=0, keepdims=True)
    e = jnp.exp(logits - m)
    zinv = pl.reciprocal(jnp.sum(e, axis=0, keepdims=True), approx=True)
    p = e * zinv                                              # (C, TM)

    # One-hot target built in-kernel: target[c, m] = (gt[m] == c).
    class_ids = jax.lax.broadcasted_iota(jnp.int32, logits.shape, 0)
    tgt = (class_ids == gt).astype(jnp.float32)               # (C, TM)

    if maskf is not None:
        tgt = tgt * maskf
        p = p * maskf

    # Lane-dense accumulation: static 128-lane chunks folded with VPU adds into
    # local vregs, one read/write of each resident (C, 128) output per tile.
    t_acc = tsum_ref[...]
    i_acc = inter_ref[...]
    p_acc = psum_ref[...]
    for k in range(tm // 128):
        sl = slice(k * 128, (k + 1) * 128)
        pk = p[:, sl]
        tk = tgt[:, sl]
        t_acc = t_acc + tk
        i_acc = i_acc + pk * tk
        p_acc = p_acc + pk
    tsum_ref[...] = t_acc
    inter_ref[...] = i_acc
    psum_ref[...] = p_acc


@functools.partial(jax.jit, static_argnames=("block_lanes",))
def gdice_loss_v2(net_output, gt, block_lanes=None):
    """net_output: (N, C, H, W) float (f32 or bf16); gt: (N, H, W) or (N, 1, H, W) int labels.

    `block_lanes` (static) optionally overrides the lane cap (used by tests to
    force multi-tile reductions at small shapes).
    """
    N, C, H, W = net_output.shape
    HW = H * W

    # Free reshapes only (no transpose / extra HBM pass). gt keeps its native
    # (possibly narrow) dtype; the cast happens in-kernel after the DMA.
    logits = net_output.reshape(N, C, HW)
    gt_flat = gt.reshape(N, 1, HW)
    # TODO(synk): the PyTorch branch where gt is already one-hot (same shape as
    # net_output) is not handled; only integer label maps are supported.

    # --- tile sizing by VMEM byte budget (sublane-padding aware) ---
    itemsize = jnp.dtype(net_output.dtype).itemsize
    sublane = (4 // itemsize) * 8                  # f32 -> 8, bf16 -> 16 sublanes/vreg
    c_pad = pl.cdiv(C, sublane) * sublane          # padded sublane footprint of the block
    hw_pad = pl.cdiv(HW, 128) * 128
    budget_lanes = max(128, (BLOCK_BYTE_BUDGET // (itemsize * c_pad)) // 128 * 128)
    max_lanes = MAX_BLOCK_LANES if block_lanes is None else block_lanes
    TM = max(128, min(hw_pad, max_lanes, budget_lanes))

    n_tiles = pl.cdiv(HW, TM)
    # Megacore coverage (v7x): with N == 1 the batch axis can't feed two cores,
    # so split the pixel range into S=2 independent halves (neutral on v5e/v6e).
    S = 2 if N == 1 else 1
    tiles_per_seg = pl.cdiv(n_tiles, S)
    needs_mask = (S * tiles_per_seg * TM) != HW

    if S == 1:
        def pix_block(n, s, j):
            return j
    else:
        last = n_tiles - 1

        def pix_block(n, s, j):
            # Clamp so the over-hanging tile of an uneven split never DMAs out of
            # bounds; its contribution is fully masked to zero in the kernel.
            return jnp.minimum(s * tiles_per_seg + j, last)

    kernel = functools.partial(_gdice_partial_kernel, HW, TM, tiles_per_seg, needs_mask)

    partial_shape = jax.ShapeDtypeStruct((N, S, C, 128), jnp.float32)
    out_block = pl.BlockSpec((None, None, C, 128), lambda n, s, j: (n, s, 0, 0))

    tsum_p, inter_p, psum_p = pl.pallas_call(
        kernel,
        out_shape=(partial_shape, partial_shape, partial_shape),
        grid_spec=pltpu.PrefetchScalarGridSpec(
            num_scalar_prefetch=0,
            grid=(N, S, tiles_per_seg),
            in_specs=[
                pl.BlockSpec((None, C, TM), lambda n, s, j: (n, 0, pix_block(n, s, j))),
                pl.BlockSpec((None, 1, TM), lambda n, s, j: (n, 0, pix_block(n, s, j))),
            ],
            out_specs=(out_block, out_block, out_block),
        ),
        compiler_params=pltpu.CompilerParams(
            # (batch, segment) axes are independent (megacore-shardable); the
            # pixel-tile axis is a reduction onto resident output blocks.
            dimension_semantics=("parallel", "parallel", "arbitrary"),
            vmem_limit_bytes=VMEM_LIMIT_BYTES),
    )(logits, gt_flat)

    # Tiny epilogue: fold the lane-dense per-(batch, segment) partials.
    t_sum = tsum_p.sum(axis=(0, 1, 3))            # (C,)
    inter = inter_p.sum(axis=(0, 1, 3))           # (C,)
    psum = psum_p.sum(axis=(0, 1, 3))             # (C,)

    w = 1.0 / jnp.maximum(t_sum * t_sum, SMOOTH)
    intersect = jnp.sum(inter * w)
    denominator = jnp.maximum(jnp.sum((psum + t_sum) * w), SMOOTH)
    return -2.0 * intersect / denominator


def _reference(net_output, gt):
    """Pure-JAX reference mirroring the PyTorch forward."""
    N, C, H, W = net_output.shape
    p = jax.nn.softmax(net_output.astype(jnp.float32), axis=1)
    y_onehot = jax.nn.one_hot(gt.reshape(N, H, W), C, axis=1, dtype=jnp.float32)
    inp = jnp.transpose(p, (1, 0, 2, 3)).reshape(C, -1)
    tgt = jnp.transpose(y_onehot, (1, 0, 2, 3)).reshape(C, -1)
    t_sum = tgt.sum(-1)
    w = 1.0 / jnp.maximum(t_sum * t_sum, SMOOTH)
    intersect = ((inp * tgt).sum(-1) * w).sum()
    denominator = jnp.maximum(((inp + tgt).sum(-1) * w).sum(), SMOOTH)
    return -2.0 * intersect / denominator


if __name__ == "__main__":
    key = jax.random.PRNGKey(0)
    k1, k2 = jax.random.split(key)

    # Tolerances account for pl.reciprocal(approx=True) in the softmax denominator.
    RTOL, ATOL = 2e-3, 1e-5

    # Case 1: basic (HW multiple of 128, N >= 2 -> single-segment path).
    N, C, H, W = 2, 4, 16, 16
    x1 = jax.random.normal(k1, (N, C, H, W), dtype=jnp.float32)
    g1 = jax.random.randint(k2, (N, H, W), 0, C, dtype=jnp.int32)
    l1 = gdice_loss_v2(x1, g1)
    jax.block_until_ready(l1)
    np.testing.assert_allclose(np.asarray(l1), np.asarray(_reference(x1, g1)),
                               rtol=RTOL, atol=ATOL)

    # Case 2: ragged HW (pad + mask path).
    x2 = jax.random.normal(k1, (2, 4, 10, 13), dtype=jnp.float32)
    g2 = jax.random.randint(k2, (2, 10, 13), 0, 4, dtype=jnp.int32)
    l2 = gdice_loss_v2(x2, g2)
    jax.block_until_ready(l2)
    np.testing.assert_allclose(np.asarray(l2), np.asarray(_reference(x2, g2)),
                               rtol=RTOL, atol=ATOL)

    # Case 3: N == 1 -> megacore split (S=2), including the clamped fully-masked tile.
    x3 = jax.random.normal(k1, (1, 4, 16, 16), dtype=jnp.float32)
    g3 = jax.random.randint(k2, (1, 16, 16), 0, 4, dtype=jnp.int32)
    l3 = gdice_loss_v2(x3, g3)
    jax.block_until_ready(l3)
    np.testing.assert_allclose(np.asarray(l3), np.asarray(_reference(x3, g3)),
                               rtol=RTOL, atol=ATOL)

    # Case 4: bf16 logits, odd class count, forced small tiles -> multi-tile
    # reduction along j plus boundary masking.
    x4 = jax.random.normal(k1, (2, 6, 20, 20), dtype=jnp.bfloat16)
    g4 = jax.random.randint(k2, (2, 20, 20), 0, 6, dtype=jnp.int32)
    l4 = gdice_loss_v2(x4, g4, block_lanes=128)
    jax.block_until_ready(l4)
    np.testing.assert_allclose(np.asarray(l4), np.asarray(_reference(x4, g4)),
                               rtol=5e-3, atol=1e-4)

    print("KERNEL_OK")
</pallas_src>

<mosaic_0001>
module attributes {stable_mosaic.version = 11 : i64} {
  func.func @_gdice_partial_kernel(%arg0: i32, %arg1: i32, %arg2: i32, %arg3: memref<1x4x256xf32, #tpu.memory_space<vmem>>, %arg4: memref<1x1x256xi32, #tpu.memory_space<vmem>>, %arg5: memref<1x1x4x128xf32, #tpu.memory_space<vmem>>, %arg6: memref<1x1x4x128xf32, #tpu.memory_space<vmem>>, %arg7: memref<1x1x4x128xf32, #tpu.memory_space<vmem>>) attributes {dimension_semantics = [#tpu.dimension_semantics<parallel>, #tpu.dimension_semantics<parallel>, #tpu.dimension_semantics<arbitrary>], iteration_bounds = array<i64: 2, 1, 1>, scalar_prefetch = 0 : i64, scratch_operands = 0 : i64, tpu.core_type = #tpu.core_type<tc>, window_params = [{transform_indices = @transform_0, window_bounds = array<i64: 1, 4, 256>}, {transform_indices = @transform_1, window_bounds = array<i64: 1, 1, 256>}, {transform_indices = @transform_2, window_bounds = array<i64: 1, 1, 4, 128>}, {transform_indices = @transform_3, window_bounds = array<i64: 1, 1, 4, 128>}, {transform_indices = @transform_4, window_bounds = array<i64: 1, 1, 4, 128>}]} {
    %c0_i32 = arith.constant 0 : i32
    %0 = arith.cmpi eq, %arg2, %c0_i32 : i32
    %1 = arith.extui %0 : i1 to i32
    %c0_i32_0 = arith.constant 0 : i32
    %2 = arith.cmpi ne, %1, %c0_i32_0 : i32
    scf.if %2 {
      %cst_31 = arith.constant 0.000000e+00 : f32
      %49 = vector.broadcast %cst_31 : f32 to vector<4x128xf32>
      %c0_32 = arith.constant 0 : index
      %c0_33 = arith.constant 0 : index
      %c0_34 = arith.constant 0 : index
      %c0_35 = arith.constant 0 : index
      %50 = vector.load %arg5[%c0_32, %c0_33, %c0_34, %c0_35] : memref<1x1x4x128xf32, #tpu.memory_space<vmem>>, vector<1x1x4x128xf32>
      %51 = vector.shape_cast %50 : vector<1x1x4x128xf32> to vector<4x128xf32>
      %52 = vector.shape_cast %49 : vector<4x128xf32> to vector<1x1x4x128xf32>
      tpu.vector_store %arg5[%c0_32, %c0_33, %c0_34, %c0_35], %52 {strides = array<i32>} : memref<1x1x4x128xf32, #tpu.memory_space<vmem>>, vector<1x1x4x128xf32>,
      %cst_36 = arith.constant 0.000000e+00 : f32
      %53 = vector.broadcast %cst_36 : f32 to vector<4x128xf32>
      %c0_37 = arith.constant 0 : index
      %c0_38 = arith.constant 0 : index
      %c0_39 = arith.constant 0 : index
      %c0_40 = arith.constant 0 : index
      %54 = vector.load %arg6[%c0_37, %c0_38, %c0_39, %c0_40] : memref<1x1x4x128xf32, #tpu.memory_space<vmem>>, vector<1x1x4x128xf32>
      %55 = vector.shape_cast %54 : vector<1x1x4x128xf32> to vector<4x128xf32>
      %56 = vector.shape_cast %53 : vector<4x128xf32> to vector<1x1x4x128xf32>
      tpu.vector_store %arg6[%c0_37, %c0_38, %c0_39, %c0_40], %56 {strides = array<i32>} : memref<1x1x4x128xf32, #tpu.memory_space<vmem>>, vector<1x1x4x128xf32>,
      %cst_41 = arith.constant 0.000000e+00 : f32
      %57 = vector.broadcast %cst_41 : f32 to vector<4x128xf32>
      %c0_42 = arith.constant 0 : index
      %c0_43 = arith.constant 0 : index
      %c0_44 = arith.constant 0 : index
      %c0_45 = arith.constant 0 : index
      %58 = vector.load %arg7[%c0_42, %c0_43, %c0_44, %c0_45] : memref<1x1x4x128xf32, #tpu.memory_space<vmem>>, vector<1x1x4x128xf32>
      %59 = vector.shape_cast %58 : vector<1x1x4x128xf32> to vector<4x128xf32>
      %60 = vector.shape_cast %57 : vector<4x128xf32> to vector<1x1x4x128xf32>
      tpu.vector_store %arg7[%c0_42, %c0_43, %c0_44, %c0_45], %60 {strides = array<i32>} : memref<1x1x4x128xf32, #tpu.memory_space<vmem>>, vector<1x1x4x128xf32>,
    } else {
    }
    %c0 = arith.constant 0 : index
    %c0_1 = arith.constant 0 : index
    %c0_2 = arith.constant 0 : index
    %3 = vector.load %arg3[%c0, %c0_1, %c0_2] : memref<1x4x256xf32, #tpu.memory_space<vmem>>, vector<1x4x256xf32>
    %4 = vector.shape_cast %3 : vector<1x4x256xf32> to vector<4x256xf32>
    %c0_3 = arith.constant 0 : index
    %c0_4 = arith.constant 0 : index
    %c0_5 = arith.constant 0 : index
    %5 = vector.load %arg4[%c0_3, %c0_4, %c0_5] : memref<1x1x256xi32, #tpu.memory_space<vmem>>, vector<1x1x256xi32>
    %6 = vector.shape_cast %5 : vector<1x1x256xi32> to vector<1x256xi32>
    %cst = arith.constant dense<0xFF800000> : vector<256xf32>
    %7 = vector.multi_reduction <maximumf>, %4, %cst [0] : vector<4x256xf32> to vector<256xf32>
    %8 = vector.shape_cast %7 : vector<256xf32> to vector<1x256xf32>
    %9 = vector.broadcast %8 : vector<1x256xf32> to vector<4x256xf32>
    %10 = arith.subf %4, %9 : vector<4x256xf32>
    %11 = math.exp %10 : vector<4x256xf32>
    %cst_6 = arith.constant dense<0.000000e+00> : vector<256xf32>
    %12 = vector.multi_reduction <add>, %11, %cst_6 [0] : vector<4x256xf32> to vector<256xf32>
    %13 = vector.shape_cast %12 : vector<256xf32> to vector<1x256xf32>
    %14 = tpu.reciprocal %13 {approx = true} : vector<1x256xf32> -> vector<1x256xf32>
    %15 = vector.broadcast %14 : vector<1x256xf32> to vector<4x256xf32>
    %16 = arith.mulf %11, %15 : vector<4x256xf32>
    %17 = tpu.iota {dimensions = array<i32: 0>} : vector<4x256xi32>
    %18 = vector.broadcast %6 : vector<1x256xi32> to vector<4x256xi32>
    %19 = arith.cmpi eq, %17, %18 : vector<4x256xi32>
    %20 = arith.extui %19 : vector<4x256xi1> to vector<4x256xi32>
    %21 = arith.sitofp %20 : vector<4x256xi32> to vector<4x256xf32>
    %c0_7 = arith.constant 0 : index
    %c0_8 = arith.constant 0 : index
    %c0_9 = arith.constant 0 : index
    %c0_10 = arith.constant 0 : index
    %22 = vector.load %arg5[%c0_7, %c0_8, %c0_9, %c0_10] : memref<1x1x4x128xf32, #tpu.memory_space<vmem>>, vector<1x1x4x128xf32>
    %23 = vector.shape_cast %22 : vector<1x1x4x128xf32> to vector<4x128xf32>
    %c0_11 = arith.constant 0 : index
    %c0_12 = arith.constant 0 : index
    %c0_13 = arith.constant 0 : index
    %c0_14 = arith.constant 0 : index
    %24 = vector.load %arg6[%c0_11, %c0_12, %c0_13, %c0_14] : memref<1x1x4x128xf32, #tpu.memory_space<vmem>>, vector<1x1x4x128xf32>
    %25 = vector.shape_cast %24 : vector<1x1x4x128xf32> to vector<4x128xf32>
    %c0_15 = arith.constant 0 : index
    %c0_16 = arith.constant 0 : index
    %c0_17 = arith.constant 0 : index
    %c0_18 = arith.constant 0 : index
    %26 = vector.load %arg7[%c0_15, %c0_16, %c0_17, %c0_18] : memref<1x1x4x128xf32, #tpu.memory_space<vmem>>, vector<1x1x4x128xf32>
    %27 = vector.shape_cast %26 : vector<1x1x4x128xf32> to vector<4x128xf32>
    %28 = vector.extract_strided_slice %16 {offsets = [0, 0], sizes = [4, 128], strides = [1, 1]} : vector<4x256xf32> to vector<4x128xf32>
    %29 = vector.extract_strided_slice %21 {offsets = [0, 0], sizes = [4, 128], strides = [1, 1]} : vector<4x256xf32> to vector<4x128xf32>
    %30 = arith.addf %23, %29 : vector<4x128xf32>
    %31 = arith.mulf %28, %29 : vector<4x128xf32>
    %32 = arith.addf %25, %31 : vector<4x128xf32>
    %33 = arith.addf %27, %28 : vector<4x128xf32>
    %34 = vector.extract_strided_slice %16 {offsets = [0, 128], sizes = [4, 128], strides = [1, 1]} : vector<4x256xf32> to vector<4x128xf32>
    %35 = vector.extract_strided_slice %21 {offsets = [0, 128], sizes = [4, 128], strides = [1, 1]} : vector<4x256xf32> to vector<4x128xf32>
    %36 = arith.addf %30, %35 : vector<4x128xf32>
    %37 = arith.mulf %34, %35 : vector<4x128xf32>
    %38 = arith.addf %32, %37 : vector<4x128xf32>
    %39 = arith.addf %33, %34 : vector<4x128xf32>
    %c0_19 = arith.constant 0 : index
    %c0_20 = arith.constant 0 : index
    %c0_21 = arith.constant 0 : index
    %c0_22 = arith.constant 0 : index
    %40 = vector.load %arg5[%c0_19, %c0_20, %c0_21, %c0_22] : memref<1x1x4x128xf32, #tpu.memory_space<vmem>>, vector<1x1x4x128xf32>
    %41 = vector.shape_cast %40 : vector<1x1x4x128xf32> to vector<4x128xf32>
    %42 = vector.shape_cast %36 : vector<4x128xf32> to vector<1x1x4x128xf32>
    tpu.vector_store %arg5[%c0_19, %c0_20, %c0_21, %c0_22], %42 {strides = array<i32>} : memref<1x1x4x128xf32, #tpu.memory_space<vmem>>, vector<1x1x4x128xf32>,
    %c0_23 = arith.constant 0 : index
    %c0_24 = arith.constant 0 : index
    %c0_25 = arith.constant 0 : index
    %c0_26 = arith.constant 0 : index
    %43 = vector.load %arg6[%c0_23, %c0_24, %c0_25, %c0_26] : memref<1x1x4x128xf32, #tpu.memory_space<vmem>>, vector<1x1x4x128xf32>
    %44 = vector.shape_cast %43 : vector<1x1x4x128xf32> to vector<4x128xf32>
    %45 = vector.shape_cast %38 : vector<4x128xf32> to vector<1x1x4x128xf32>
    tpu.vector_store %arg6[%c0_23, %c0_24, %c0_25, %c0_26], %45 {strides = array<i32>} : memref<1x1x4x128xf32, #tpu.memory_space<vmem>>, vector<1x1x4x128xf32>,
    %c0_27 = arith.constant 0 : index
    %c0_28 = arith.constant 0 : index
    %c0_29 = arith.constant 0 : index
    %c0_30 = arith.constant 0 : index
    %46 = vector.load %arg7[%c0_27, %c0_28, %c0_29, %c0_30] : memref<1x1x4x128xf32, #tpu.memory_space<vmem>>, vector<1x1x4x128xf32>
    %47 = vector.shape_cast %46 : vector<1x1x4x128xf32> to vector<4x128xf32>
    %48 = vector.shape_cast %39 : vector<4x128xf32> to vector<1x1x4x128xf32>
    tpu.vector_store %arg7[%c0_27, %c0_28, %c0_29, %c0_30], %48 {strides = array<i32>} : memref<1x1x4x128xf32, #tpu.memory_space<vmem>>, vector<1x1x4x128xf32>,
    return
  }
  func.func @transform_0(%arg0: i32, %arg1: i32, %arg2: i32) -> (i32, i32, i32) {
    %c0_i32 = arith.constant 0 : i32
    %c0_i32_0 = arith.constant 0 : i32
    return %arg0, %c0_i32, %arg2 : i32, i32, i32
  }
  func.func @transform_1(%arg0: i32, %arg1: i32, %arg2: i32) -> (i32, i32, i32) {
    %c0_i32 = arith.constant 0 : i32
    %c0_i32_0 = arith.constant 0 : i32
    return %arg0, %c0_i32, %arg2 : i32, i32, i32
  }
  func.func @transform_2(%arg0: i32, %arg1: i32, %arg2: i32) -> (i32, i32, i32, i32) {
    %c0_i32 = arith.constant 0 : i32
    %c0_i32_0 = arith.constant 0 : i32
    %c0_i32_1 = arith.constant 0 : i32
    return %arg0, %arg1, %c0_i32, %c0_i32_0 : i32, i32, i32, i32
  }
  func.func @transform_3(%arg0: i32, %arg1: i32, %arg2: i32) -> (i32, i32, i32, i32) {
    %c0_i32 = arith.constant 0 : i32
    %c0_i32_0 = arith.constant 0 : i32
    %c0_i32_1 = arith.constant 0 : i32
    return %arg0, %arg1, %c0_i32, %c0_i32_0 : i32, i32, i32, i32
  }
  func.func @transform_4(%arg0: i32, %arg1: i32, %arg2: i32) -> (i32, i32, i32, i32) {
    %c0_i32 = arith.constant 0 : i32
    %c0_i32_0 = arith.constant 0 : i32
    %c0_i32_1 = arith.constant 0 : i32
    return %arg0, %arg1, %c0_i32, %c0_i32_0 : i32, i32, i32, i32
  }
}

</mosaic_0001>

<bundles_post_ra>
// kernel: gdice_loss_v2.1
= control target key start
LH: loop header
LB: loop body
LE: loop exit
PB: predicated region body
PF: predicated region fallthrough
CT: control target
= control target key end

     0   :  { %s677_s15 = smov 0   ;;  %s679_s16 = smov 0   ;;  %s738_s0 = inlined_call_operand.vmem [shape: f32[2,4,256], index: 0, kind: input, shape index: {}]   ;;  %s739_s1 = inlined_call_operand.vmem [shape: s32[2,1,256], index: 1, kind: input, shape index: {}]   ;;  %s740_s2 = inlined_call_operand.vmem [shape: f32[2,1,4,128], index: 2, kind: output, shape index: {0}]   ;;  %s741_s3 = inlined_call_operand.vmem [shape: f32[2,1,4,128], index: 3, kind: output, shape index: {1}]   ;;  %s742_s4 = inlined_call_operand.vmem [shape: f32[2,1,4,128], index: 4, kind: output, shape index: {2}]  }
   0x1   :  { %s681_s17 = smov 0  }
   0x2 LB: > { %s34_s18 = sadd.s32 1, %s645_s16  ;;  %p583_p0 = scmp.ge.s32.totalorder %s649_s17, 1  ;;  %s649_s17 = sphi %s681_s17, %s15_s17   ;;  %s645_s16 = sphi %s679_s16, %s744_s16   ;;  %s641_s15 = sphi %s677_s15, %s743_s15  }
   0x3   : > { %p36_p1 = scmp.ge.s32.totalorder %s34_s18, 2  ;;  %p215_p2 = scmp.lt.s32.totalorder %s649_s17, 3 }
   0x5   : > { %s746_s18 = smov (%p36_p1, %s34_s18), 0  ;;  %p216_p3 = pnand %p583_p0, %p215_p2 }
   0x6   : > { %p270_p4 = scmp.lt.s32.totalorder (!%p216_p3), %s641_s15, 1  ;;  %v367_v0 = vlaneseq (!%p216_p3)  ;;  %vm321_vm0 = vcmask (!%p216_p3), 1043456   ;;  %v651_v2 = vmov (!%p216_p3), 0.0  }
   0x7   : > { %219 = sbr.rel (%p216_p3) target bundleno = 87 (0x57), region = 28 }
   0x8   : > { %v368_v1 = vshrl.u32 (!%p216_p3), %v367_v0, 7 }
   0xa   : > { %v371_v4 = vsub.s32 (!%p216_p3), 0, %v368_v1  ;;  %v375_v5 = vsub.s32 (!%p216_p3), 1, %v368_v1 }
   0xe   : > { %s748_s15 = smov (!%p270_p4, %s641_s15), 1 }
   0xf   : > { %s594_s19 = sshll.u32 %s748_s15, 3  ;;  %s587_s20 = sshll.u32 %s748_s15, 2 }
  0x10   : > { %s277_s23 = scalar_lea.vmem %s738_s0, %s594_s19  ;;  %s701_s26 = scalar_lea.vmem %s740_s2, %s587_s20 }
  0x11   : > { %313 = vst [vmem:[%s701_s26] sm:$0xf] %v651_v2  ;;  %v316_v3 = vld [vmem:[%s277_s23] sm:$0xff]  ;;  %s707_s29 = scalar_lea.vmem %s741_s3, %s587_s20  ;;  %s712_s6 = scalar_lea.vmem %s742_s4, %s587_s20 }
  0x12   : > { %v319_v6 = vcombine.high %v316_v3, %v316_v3  ;;  %v322_v7 = vsel %vm321_vm0, %v316_v3, -inf  ;;  %314 = vst [vmem:[%s707_s29] sm:$0xf] %v651_v2  ;;  %315 = vst [vmem:[%s712_s6] sm:$0xf] %v651_v2  ;;  %s586_s7 = sshll.u32 %s748_s15, 1 }
  0x13   : > { %v323_v8 = vrot.slane %v322_v7, 4  ;;  %s286_s10 = scalar_lea.vmem %s739_s1, %s586_s7 }
  0x14   : > { %v329_v9 = vsel %vm321_vm0, %v319_v6, -inf  ;;  %v317_v10 = vld [vmem:[%s286_s10] sm:$0x3] }
  0x15   : > { %v324_v11 = vmax.f32 %v322_v7, %v323_v8  ;;  %v330_v12 = vrot.slane %v329_v9, 4  ;;  %v372_v13 = vrot.slane %v317_v10, %v371_v4  ;;  %v376_v14 = vrot.slane %v317_v10, %v375_v5 }
  0x17   : > { %v325_v15 = vrot.slane %v324_v11, 2  ;;  %v331_v16 = vmax.f32 %v329_v9, %v330_v12  ;;  %vm377_vm1 = vcmp.eq.s32.totalorder %v368_v1, %v372_v13  ;;  %vm378_vm2 = vcmp.eq.s32.totalorder %v368_v1, %v376_v14 }
  0x18   : > { %v590_v17 = vsel %vm377_vm1, 1.0, %v651_v2  ;;  %v383_v18 = vld [vmem:[%s701_s26] sm:$0xf]  ;;  %v591_v22 = vsel %vm378_vm2, 1.0, %v651_v2 }
  0x19   : > { %v326_v19 = vmax.f32 %v324_v11, %v325_v15  ;;  %v332_v20 = vrot.slane %v331_v16, 2  ;;  %v386_v21 = vadd.f32 %v590_v17, %v383_v18  ;;  %v385_v51 = vld [vmem:[%s712_s6] sm:$0xf] }
  0x1a   : > { %v384_v53 = vld [vmem:[%s707_s29] sm:$0xf] }
  0x1b   : > { %v327_v23 = vrot.slane %v326_v19, 1  ;;  %v333_v24 = vmax.f32 %v331_v16, %v332_v20  ;;  %v390_v25 = vadd.f32 %v591_v22, %v386_v21 }
  0x1d   : > { %v328_v26 = vmax.f32 %v326_v19, %v327_v23  ;;  %v334_v27 = vrot.slane %v333_v24, 1  ;;  %399 = vst [vmem:[%s701_s26] sm:$0xf] %v390_v25 }
  0x1f   : > { %v335_v28 = vmax.f32 %v333_v24, %v334_v27 }
  0x21   : > { %v338_v29 = vcombine.low %v328_v26, %v335_v28 }
  0x23   : > { %v340_v30 = vsub.f32 %v316_v3, %v338_v29 }
  0x25   : > { %v341_v31 = vmul.f32 1.442695, %v340_v30 }
  0x27   : > { %621 = vpow2.f32 %v341_v31 }
  0x31   : > { %v622_v32 = vpop.eup %621 }
  0x32   : > { %v344_v33 = vcombine.high %v622_v32, %v622_v32  ;;  %v346_v34 = vsel %vm321_vm0, %v622_v32, 0.0 }
  0x33   : > { %v347_v35 = vrot.slane %v346_v34, 4 }
  0x34   : > { %v353_v36 = vsel %vm321_vm0, %v344_v33, 0.0 }
  0x35   : > { %v348_v37 = vadd.f32 %v347_v35, %v346_v34  ;;  %v354_v38 = vrot.slane %v353_v36, 4 }
  0x37   : > { %v349_v39 = vrot.slane %v348_v37, 2  ;;  %v355_v40 = vadd.f32 %v354_v38, %v353_v36 }
  0x39   : > { %v350_v41 = vadd.f32 %v349_v39, %v348_v37  ;;  %v356_v42 = vrot.slane %v355_v40, 2 }
  0x3b   : > { %v351_v43 = vrot.slane %v350_v41, 1  ;;  %v357_v44 = vadd.f32 %v356_v42, %v355_v40 }
  0x3d   : > { %v358_v45 = vrot.slane %v357_v44, 1  ;;  %v352_v46 = vadd.f32 %v351_v43, %v350_v41 }
  0x3f   : > { %v359_v47 = vadd.f32 %v358_v45, %v357_v44  ;;  %623 = vrcp.f32 %v352_v46 }
  0x41   : > { %625 = vrcp.f32 %v359_v47 }
  0x49   : > { %v624_v48 = vpop.eup %623 }
  0x4b   : > { %v626_v49 = vpop.eup %625 }
  0x4c   : > { %v364_v50 = vcombine.low %v624_v48, %v626_v49 }
  0x4e   : > { %v366_v52 = vmul.f32 %v622_v32, %v364_v50 }
  0x50   : > { %v387_v54 = vmul.f32 %v590_v17, %v366_v52  ;;  %v392_v55 = vrot.slane %v366_v52, 4  ;;  %v389_v56 = vadd.f32 %v385_v51, %v366_v52  ;;  %v396_v57 = vcombine.high %v366_v52, %v366_v52 }
  0x52   : > { %v388_v58 = vadd.f32 %v387_v54, %v384_v53  ;;  %v394_v59 = vmul.f32 %v591_v22, %v392_v55  ;;  %v398_v60 = vadd.f32 %v396_v57, %v389_v56 }
  0x54   : > { %v395_v61 = vadd.f32 %v394_v59, %v388_v58  ;;  %401 = vst [vmem:[%s712_s6] sm:$0xf] %v398_v60 }
  0x56   : > { %400 = vst [vmem:[%s707_s29] sm:$0xf] %v395_v61 }
  0x57 PF: > { %s15_s17 = sadd.s32 1, %s649_s17   ;;  %s743_s15 = smov %s645_s16 }
  0x58   : > { %p12_p5 = scmp.ge.s32.totalorder %s15_s17, 4   ;;  %s744_s16 = smov %s746_s18 }
  0x5a   :  { %14 = sbr.rel (!%p12_p5) target bundleno = 2 (0x2), region = 89 }

</bundles_post_ra>
